<compile_context>
chip_gen: v5e
topology: v5e:2x2
jax: 0.10.0
libtpu: 0.0.40
codegen_flags: <defaults>
</compile_context>

<pallas_src>
import jax
import jax.numpy as jnp
from jax import lax
from jax.experimental import pallas as pl
from jax.experimental.pallas import tpu as pltpu

N_DAY_SLOTS = 48
N_WEEK_SLOTS = 7
BIAS_ROW = N_DAY_SLOTS + N_WEEK_SLOTS          # 55: constant-1 row for biases
K_PAD = 64                                     # 48 + 7 + 1 padded to 64 (sublane-aligned K)


def _round_up(v, m):
    return (v + m - 1) // m * m


def _time_emb_kernel(w_day_ref, w_week_ref, tfrac_ref, dow_ref, emb_blk_ref,
                     out_ref):
    # w_day_ref / w_week_ref : (L,)        f32  in SMEM (scalar reads)
    # tfrac_ref / dow_ref    : (L, TILE)   f32  time-of-day frac / day-of-week
    # emb_blk_ref            : (2D, 64)    f32  block-diag [day^T ; week^T] + bias col
    # out_ref                : (2D, TILE)  f32
    L, TN = tfrac_ref.shape
    K = emb_blk_ref.shape[1]

    # torch's .long() truncates toward zero; clamp to the table range so
    # boundary values (time_of_day == 1.0 -> idx 48) stay in range.
    idx_day = jnp.clip((tfrac_ref[...] * float(N_DAY_SLOTS)).astype(jnp.int32),
                       0, N_DAY_SLOTS - 1)                       # (L, TN)
    idx_week = jnp.clip(dow_ref[...].astype(jnp.int32),
                        0, N_WEEK_SLOTS - 1) + N_DAY_SLOTS       # (L, TN)

    k_iota = lax.broadcasted_iota(jnp.int32, (K, TN), 0)

    # Combined weighted one-hot.  Row BIAS_ROW is constant 1 so the matmul
    # applies both Linear biases (stored as a column of emb_blk).
    oh = jnp.where(k_iota == BIAS_ROW, 1.0, 0.0).astype(jnp.float32)
    for l in range(L):                        # L is small & static -> unrolled VPU
        wd = w_day_ref[l]
        ww = w_week_ref[l]
        oh = oh + jnp.where(k_iota == idx_day[l][None, :], wd, 0.0)
        oh = oh + jnp.where(k_iota == idx_week[l][None, :], ww, 0.0)

    # Single MXU matmul: (2D, 64) @ (64, TILE) -> (2D, TILE), biases included.
    out_ref[...] = jnp.dot(emb_blk_ref[...], oh,
                           preferred_element_type=jnp.float32)


def prepare_params(params):
    """One-time param prep (hoisted out of the forward): fused block-diagonal
    embedding table with the two Linear biases folded in as a column."""
    day_emb = params["day_emb"].astype(jnp.float32)    # (48, D)
    week_emb = params["week_emb"].astype(jnp.float32)  # (7, D)
    D = day_emb.shape[1]
    emb_blk = jnp.zeros((2 * D, K_PAD), jnp.float32)
    emb_blk = emb_blk.at[:D, :N_DAY_SLOTS].set(day_emb.T)
    emb_blk = emb_blk.at[D:, N_DAY_SLOTS:N_DAY_SLOTS + N_WEEK_SLOTS].set(week_emb.T)
    emb_blk = emb_blk.at[:D, BIAS_ROW].set(params["b_day"].reshape(()).astype(jnp.float32))
    emb_blk = emb_blk.at[D:, BIAS_ROW].set(params["b_week"].reshape(()).astype(jnp.float32))
    return {
        "emb_blk": emb_blk,                                        # (2D, 64)
        "w_day": params["w_day"].reshape(-1).astype(jnp.float32),  # (L,)
        "w_week": params["w_week"].reshape(-1).astype(jnp.float32),
    }


@jax.jit
def time_encoder_forward(x, time, prep):
    """x: (B, Cx, N, 1) f32; time: (B, L, N, F) f32. Returns (B, Cx+2D, N, 1)."""
    B, Cx, N, W = x.shape
    assert W == 1, "TimeEncoder expects trailing width 1 (Linear(L->1) output)"
    L = time.shape[1]
    # Static: derived from the concrete shape of the fused table, NOT a traced value.
    twoD = prep["emb_blk"].shape[0]
    D = twoD // 2

    # Lane-dense fold: (B, L, N) features -> (L, B*N); pad lanes to tile.
    tfrac = jnp.transpose(time[..., -2], (1, 0, 2)).reshape(L, B * N)
    dow = jnp.transpose(time[..., -1], (1, 0, 2)).reshape(L, B * N)

    M = B * N
    TILE = 512 if M >= 512 else _round_up(M, 128)
    M_pad = _round_up(M, TILE)
    if M_pad != M:
        tfrac = jnp.pad(tfrac, ((0, 0), (0, M_pad - M)))
        dow = jnp.pad(dow, ((0, 0), (0, M_pad - M)))

    grid = (M_pad // TILE,)

    out2d = pl.pallas_call(
        _time_emb_kernel,
        out_shape=jax.ShapeDtypeStruct((twoD, M_pad), jnp.float32),
        grid_spec=pltpu.PrefetchScalarGridSpec(
            num_scalar_prefetch=0,
            grid=grid,
            in_specs=[
                pl.BlockSpec(memory_space=pltpu.MemorySpace.SMEM),   # w_day  (L,)
                pl.BlockSpec(memory_space=pltpu.MemorySpace.SMEM),   # w_week (L,)
                pl.BlockSpec((L, TILE), lambda i: (0, i)),           # tfrac
                pl.BlockSpec((L, TILE), lambda i: (0, i)),           # dow
                pl.BlockSpec((twoD, K_PAD), lambda i: (0, 0)),       # emb_blk
            ],
            out_specs=pl.BlockSpec((twoD, TILE), lambda i: (0, i)),
        ),
        compiler_params=pltpu.CompilerParams(
            dimension_semantics=("parallel",)),   # >=2 tiles at prod sizes -> both v7x TCs
    )(prep["w_day"], prep["w_week"], tfrac, dow, prep["emb_blk"])

    # (2D, B*N) -> (B, 2D, N, 1); concat with x outside the kernel (no x DMA
    # through the kernel for zero compute).
    te = out2d[:, :M].reshape(twoD, B, N)
    te = jnp.transpose(te, (1, 0, 2))[..., None]
    # TODO(synk): at production D/N, cast emb_blk / one-hot to bf16 on v6e/v7x.
    return jnp.concatenate([x, te], axis=1)


def time_encoder_reference(x, time, params):
    """Pure-JAX reference mirroring the PyTorch forward exactly."""
    idx_day = (time[..., -2] * N_DAY_SLOTS).astype(jnp.int32)
    idx_week = time[..., -1].astype(jnp.int32)
    tid = params["day_emb"][idx_day]                       # (B, L, N, D)
    diw = params["week_emb"][idx_week]                     # (B, L, N, D)
    tid = jnp.transpose(tid, (0, 3, 2, 1))                 # (B, D, N, L)
    diw = jnp.transpose(diw, (0, 3, 2, 1))
    tid = tid @ params["w_day"].T + params["b_day"]        # (B, D, N, 1)
    diw = diw @ params["w_week"].T + params["b_week"]
    return jnp.concatenate([x, tid, diw], axis=1)


def make_params(key, dim, length):
    k1, k2, k3, k4, k5, k6 = jax.random.split(key, 6)
    return {
        "day_emb": jax.random.normal(k1, (N_DAY_SLOTS, dim), jnp.float32),
        "week_emb": jax.random.normal(k2, (N_WEEK_SLOTS, dim), jnp.float32),
        "w_day": jax.random.normal(k3, (1, length), jnp.float32) * 0.1,
        "b_day": jax.random.normal(k4, (1,), jnp.float32) * 0.1,
        "w_week": jax.random.normal(k5, (1, length), jnp.float32) * 0.1,
        "b_week": jax.random.normal(k6, (1,), jnp.float32) * 0.1,
    }


if __name__ == "__main__":
    B, Cx, N, L, D = 2, 4, 16, 8, 32

    key = jax.random.PRNGKey(0)
    kx, kt, kw, kp = jax.random.split(key, 4)

    x = jax.random.normal(kx, (B, Cx, N, 1), jnp.float32)
    time_of_day = jax.random.uniform(kt, (B, L, N), jnp.float32,
                                     minval=0.0, maxval=0.999)
    day_of_week = jax.random.randint(kw, (B, L, N), 0, 7).astype(jnp.float32)
    time = jnp.stack([time_of_day, day_of_week], axis=-1)   # (B, L, N, 2)

    params = make_params(kp, D, L)
    prep = prepare_params(params)        # one-time table prep (hoisted)

    out = time_encoder_forward(x, time, prep)
    out = jax.block_until_ready(out)

    ref = time_encoder_reference(x, time, params)
    assert out.shape == (B, Cx + 2 * D, N, 1), out.shape
    assert jnp.allclose(out, ref, atol=1e-5, rtol=1e-5), \
        float(jnp.max(jnp.abs(out - ref)))

    print("KERNEL_OK")
</pallas_src>

<mosaic_0001>
module attributes {stable_mosaic.version = 11 : i64} {
  func.func @_time_emb_kernel(%arg0: i32, %arg1: memref<8xf32, #tpu.memory_space<smem>>, %arg2: memref<8xf32, #tpu.memory_space<smem>>, %arg3: memref<8x128xf32, #tpu.memory_space<vmem>>, %arg4: memref<8x128xf32, #tpu.memory_space<vmem>>, %arg5: memref<64x64xf32, #tpu.memory_space<vmem>>, %arg6: memref<64x128xf32, #tpu.memory_space<vmem>>) attributes {dimension_semantics = [#tpu.dimension_semantics<parallel>], iteration_bounds = array<i64: 1>, scalar_prefetch = 0 : i64, scratch_operands = 0 : i64, tpu.core_type = #tpu.core_type<tc>, window_params = [{transform_indices = @transform_0, window_bounds = array<i64: 8>}, {transform_indices = @transform_1, window_bounds = array<i64: 8>}, {transform_indices = @transform_2, window_bounds = array<i64: 8, 128>}, {transform_indices = @transform_3, window_bounds = array<i64: 8, 128>}, {pipeline_mode = #tpu.pipeline_mode<synchronous>, transform_indices = @transform_4, window_bounds = array<i64: 64, 64>}, {transform_indices = @transform_5, window_bounds = array<i64: 64, 128>}]} {
    %c0 = arith.constant 0 : index
    %c0_0 = arith.constant 0 : index
    %0 = vector.load %arg3[%c0, %c0_0] : memref<8x128xf32, #tpu.memory_space<vmem>>, vector<8x128xf32>
    %cst = arith.constant 4.800000e+01 : f32
    %1 = vector.broadcast %cst : f32 to vector<8x128xf32>
    %2 = arith.mulf %0, %1 : vector<8x128xf32>
    %3 = arith.fptosi %2 : vector<8x128xf32> to vector<8x128xi32>
    %c0_i32 = arith.constant 0 : i32
    %c47_i32 = arith.constant 47 : i32
    %4 = vector.broadcast %c0_i32 : i32 to vector<8x128xi32>
    %5 = arith.maxsi %4, %3 : vector<8x128xi32>
    %6 = vector.broadcast %c47_i32 : i32 to vector<8x128xi32>
    %7 = arith.minsi %6, %5 : vector<8x128xi32>
    %c0_1 = arith.constant 0 : index
    %c0_2 = arith.constant 0 : index
    %8 = vector.load %arg4[%c0_1, %c0_2] : memref<8x128xf32, #tpu.memory_space<vmem>>, vector<8x128xf32>
    %9 = arith.fptosi %8 : vector<8x128xf32> to vector<8x128xi32>
    %c0_i32_3 = arith.constant 0 : i32
    %c6_i32 = arith.constant 6 : i32
    %10 = vector.broadcast %c0_i32_3 : i32 to vector<8x128xi32>
    %11 = arith.maxsi %10, %9 : vector<8x128xi32>
    %12 = vector.broadcast %c6_i32 : i32 to vector<8x128xi32>
    %13 = arith.minsi %12, %11 : vector<8x128xi32>
    %c48_i32 = arith.constant 48 : i32
    %14 = vector.broadcast %c48_i32 : i32 to vector<8x128xi32>
    %15 = arith.addi %13, %14 : vector<8x128xi32>
    %16 = tpu.iota {dimensions = array<i32: 0>} : vector<64x128xi32>
    %c55_i32 = arith.constant 55 : i32
    %17 = vector.broadcast %c55_i32 : i32 to vector<64x128xi32>
    %18 = arith.cmpi eq, %16, %17 : vector<64x128xi32>
    %cst_4 = arith.constant 1.000000e+00 : f32
    %cst_5 = arith.constant 0.000000e+00 : f32
    %19 = vector.broadcast %cst_4 : f32 to vector<64x128xf32>
    %20 = vector.broadcast %cst_5 : f32 to vector<64x128xf32>
    %21 = arith.select %18, %19, %20 : vector<64x128xi1>, vector<64x128xf32>
    %c0_6 = arith.constant 0 : index
    %22 = memref.load %arg1[%c0_6] : memref<8xf32, #tpu.memory_space<smem>>
    %c0_7 = arith.constant 0 : index
    %23 = memref.load %arg2[%c0_7] : memref<8xf32, #tpu.memory_space<smem>>
    %24 = vector.extract_strided_slice %7 {offsets = [0, 0], sizes = [1, 128], strides = [1, 1]} : vector<8x128xi32> to vector<1x128xi32>
    %25 = vector.shape_cast %24 : vector<1x128xi32> to vector<128xi32>
    %26 = vector.shape_cast %25 : vector<128xi32> to vector<1x128xi32>
    %27 = vector.broadcast %26 : vector<1x128xi32> to vector<64x128xi32>
    %28 = arith.cmpi eq, %16, %27 : vector<64x128xi32>
    %cst_8 = arith.constant 0.000000e+00 : f32
    %29 = vector.broadcast %22 : f32 to vector<64x128xf32>
    %30 = vector.broadcast %cst_8 : f32 to vector<64x128xf32>
    %31 = arith.select %28, %29, %30 : vector<64x128xi1>, vector<64x128xf32>
    %32 = arith.addf %21, %31 : vector<64x128xf32>
    %33 = vector.extract_strided_slice %15 {offsets = [0, 0], sizes = [1, 128], strides = [1, 1]} : vector<8x128xi32> to vector<1x128xi32>
    %34 = vector.shape_cast %33 : vector<1x128xi32> to vector<128xi32>
    %35 = vector.shape_cast %34 : vector<128xi32> to vector<1x128xi32>
    %36 = vector.broadcast %35 : vector<1x128xi32> to vector<64x128xi32>
    %37 = arith.cmpi eq, %16, %36 : vector<64x128xi32>
    %cst_9 = arith.constant 0.000000e+00 : f32
    %38 = vector.broadcast %23 : f32 to vector<64x128xf32>
    %39 = vector.broadcast %cst_9 : f32 to vector<64x128xf32>
    %40 = arith.select %37, %38, %39 : vector<64x128xi1>, vector<64x128xf32>
    %41 = arith.addf %32, %40 : vector<64x128xf32>
    %c1 = arith.constant 1 : index
    %42 = memref.load %arg1[%c1] : memref<8xf32, #tpu.memory_space<smem>>
    %c1_10 = arith.constant 1 : index
    %43 = memref.load %arg2[%c1_10] : memref<8xf32, #tpu.memory_space<smem>>
    %44 = vector.extract_strided_slice %7 {offsets = [1, 0], sizes = [1, 128], strides = [1, 1]} : vector<8x128xi32> to vector<1x128xi32>
    %45 = vector.shape_cast %44 : vector<1x128xi32> to vector<128xi32>
    %46 = vector.shape_cast %45 : vector<128xi32> to vector<1x128xi32>
    %47 = vector.broadcast %46 : vector<1x128xi32> to vector<64x128xi32>
    %48 = arith.cmpi eq, %16, %47 : vector<64x128xi32>
    %cst_11 = arith.constant 0.000000e+00 : f32
    %49 = vector.broadcast %42 : f32 to vector<64x128xf32>
    %50 = vector.broadcast %cst_11 : f32 to vector<64x128xf32>
    %51 = arith.select %48, %49, %50 : vector<64x128xi1>, vector<64x128xf32>
    %52 = arith.addf %41, %51 : vector<64x128xf32>
    %53 = vector.extract_strided_slice %15 {offsets = [1, 0], sizes = [1, 128], strides = [1, 1]} : vector<8x128xi32> to vector<1x128xi32>
    %54 = vector.shape_cast %53 : vector<1x128xi32> to vector<128xi32>
    %55 = vector.shape_cast %54 : vector<128xi32> to vector<1x128xi32>
    %56 = vector.broadcast %55 : vector<1x128xi32> to vector<64x128xi32>
    %57 = arith.cmpi eq, %16, %56 : vector<64x128xi32>
    %cst_12 = arith.constant 0.000000e+00 : f32
    %58 = vector.broadcast %43 : f32 to vector<64x128xf32>
    %59 = vector.broadcast %cst_12 : f32 to vector<64x128xf32>
    %60 = arith.select %57, %58, %59 : vector<64x128xi1>, vector<64x128xf32>
    %61 = arith.addf %52, %60 : vector<64x128xf32>
    %c2 = arith.constant 2 : index
    %62 = memref.load %arg1[%c2] : memref<8xf32, #tpu.memory_space<smem>>
    %c2_13 = arith.constant 2 : index
    %63 = memref.load %arg2[%c2_13] : memref<8xf32, #tpu.memory_space<smem>>
    %64 = vector.extract_strided_slice %7 {offsets = [2, 0], sizes = [1, 128], strides = [1, 1]} : vector<8x128xi32> to vector<1x128xi32>
    %65 = vector.shape_cast %64 : vector<1x128xi32> to vector<128xi32>
    %66 = vector.shape_cast %65 : vector<128xi32> to vector<1x128xi32>
    %67 = vector.broadcast %66 : vector<1x128xi32> to vector<64x128xi32>
    %68 = arith.cmpi eq, %16, %67 : vector<64x128xi32>
    %cst_14 = arith.constant 0.000000e+00 : f32
    %69 = vector.broadcast %62 : f32 to vector<64x128xf32>
    %70 = vector.broadcast %cst_14 : f32 to vector<64x128xf32>
    %71 = arith.select %68, %69, %70 : vector<64x128xi1>, vector<64x128xf32>
    %72 = arith.addf %61, %71 : vector<64x128xf32>
    %73 = vector.extract_strided_slice %15 {offsets = [2, 0], sizes = [1, 128], strides = [1, 1]} : vector<8x128xi32> to vector<1x128xi32>
    %74 = vector.shape_cast %73 : vector<1x128xi32> to vector<128xi32>
    %75 = vector.shape_cast %74 : vector<128xi32> to vector<1x128xi32>
    %76 = vector.broadcast %75 : vector<1x128xi32> to vector<64x128xi32>
    %77 = arith.cmpi eq, %16, %76 : vector<64x128xi32>
    %cst_15 = arith.constant 0.000000e+00 : f32
    %78 = vector.broadcast %63 : f32 to vector<64x128xf32>
    %79 = vector.broadcast %cst_15 : f32 to vector<64x128xf32>
    %80 = arith.select %77, %78, %79 : vector<64x128xi1>, vector<64x128xf32>
    %81 = arith.addf %72, %80 : vector<64x128xf32>
    %c3 = arith.constant 3 : index
    %82 = memref.load %arg1[%c3] : memref<8xf32, #tpu.memory_space<smem>>
    %c3_16 = arith.constant 3 : index
    %83 = memref.load %arg2[%c3_16] : memref<8xf32, #tpu.memory_space<smem>>
    %84 = vector.extract_strided_slice %7 {offsets = [3, 0], sizes = [1, 128], strides = [1, 1]} : vector<8x128xi32> to vector<1x128xi32>
    %85 = vector.shape_cast %84 : vector<1x128xi32> to vector<128xi32>
    %86 = vector.shape_cast %85 : vector<128xi32> to vector<1x128xi32>
    %87 = vector.broadcast %86 : vector<1x128xi32> to vector<64x128xi32>
    %88 = arith.cmpi eq, %16, %87 : vector<64x128xi32>
    %cst_17 = arith.constant 0.000000e+00 : f32
    %89 = vector.broadcast %82 : f32 to vector<64x128xf32>
    %90 = vector.broadcast %cst_17 : f32 to vector<64x128xf32>
    %91 = arith.select %88, %89, %90 : vector<64x128xi1>, vector<64x128xf32>
    %92 = arith.addf %81, %91 : vector<64x128xf32>
    %93 = vector.extract_strided_slice %15 {offsets = [3, 0], sizes = [1, 128], strides = [1, 1]} : vector<8x128xi32> to vector<1x128xi32>
    %94 = vector.shape_cast %93 : vector<1x128xi32> to vector<128xi32>
    %95 = vector.shape_cast %94 : vector<128xi32> to vector<1x128xi32>
    %96 = vector.broadcast %95 : vector<1x128xi32> to vector<64x128xi32>
    %97 = arith.cmpi eq, %16, %96 : vector<64x128xi32>
    %cst_18 = arith.constant 0.000000e+00 : f32
    %98 = vector.broadcast %83 : f32 to vector<64x128xf32>
    %99 = vector.broadcast %cst_18 : f32 to vector<64x128xf32>
    %100 = arith.select %97, %98, %99 : vector<64x128xi1>, vector<64x128xf32>
    %101 = arith.addf %92, %100 : vector<64x128xf32>
    %c4 = arith.constant 4 : index
    %102 = memref.load %arg1[%c4] : memref<8xf32, #tpu.memory_space<smem>>
    %c4_19 = arith.constant 4 : index
    %103 = memref.load %arg2[%c4_19] : memref<8xf32, #tpu.memory_space<smem>>
    %104 = vector.extract_strided_slice %7 {offsets = [4, 0], sizes = [1, 128], strides = [1, 1]} : vector<8x128xi32> to vector<1x128xi32>
    %105 = vector.shape_cast %104 : vector<1x128xi32> to vector<128xi32>
    %106 = vector.shape_cast %105 : vector<128xi32> to vector<1x128xi32>
    %107 = vector.broadcast %106 : vector<1x128xi32> to vector<64x128xi32>
    %108 = arith.cmpi eq, %16, %107 : vector<64x128xi32>
    %cst_20 = arith.constant 0.000000e+00 : f32
    %109 = vector.broadcast %102 : f32 to vector<64x128xf32>
    %110 = vector.broadcast %cst_20 : f32 to vector<64x128xf32>
    %111 = arith.select %108, %109, %110 : vector<64x128xi1>, vector<64x128xf32>
    %112 = arith.addf %101, %111 : vector<64x128xf32>
    %113 = vector.extract_strided_slice %15 {offsets = [4, 0], sizes = [1, 128], strides = [1, 1]} : vector<8x128xi32> to vector<1x128xi32>
    %114 = vector.shape_cast %113 : vector<1x128xi32> to vector<128xi32>
    %115 = vector.shape_cast %114 : vector<128xi32> to vector<1x128xi32>
    %116 = vector.broadcast %115 : vector<1x128xi32> to vector<64x128xi32>
    %117 = arith.cmpi eq, %16, %116 : vector<64x128xi32>
    %cst_21 = arith.constant 0.000000e+00 : f32
    %118 = vector.broadcast %103 : f32 to vector<64x128xf32>
    %119 = vector.broadcast %cst_21 : f32 to vector<64x128xf32>
    %120 = arith.select %117, %118, %119 : vector<64x128xi1>, vector<64x128xf32>
    %121 = arith.addf %112, %120 : vector<64x128xf32>
    %c5 = arith.constant 5 : index
    %122 = memref.load %arg1[%c5] : memref<8xf32, #tpu.memory_space<smem>>
    %c5_22 = arith.constant 5 : index
    %123 = memref.load %arg2[%c5_22] : memref<8xf32, #tpu.memory_space<smem>>
    %124 = vector.extract_strided_slice %7 {offsets = [5, 0], sizes = [1, 128], strides = [1, 1]} : vector<8x128xi32> to vector<1x128xi32>
    %125 = vector.shape_cast %124 : vector<1x128xi32> to vector<128xi32>
    %126 = vector.shape_cast %125 : vector<128xi32> to vector<1x128xi32>
    %127 = vector.broadcast %126 : vector<1x128xi32> to vector<64x128xi32>
    %128 = arith.cmpi eq, %16, %127 : vector<64x128xi32>
    %cst_23 = arith.constant 0.000000e+00 : f32
    %129 = vector.broadcast %122 : f32 to vector<64x128xf32>
    %130 = vector.broadcast %cst_23 : f32 to vector<64x128xf32>
    %131 = arith.select %128, %129, %130 : vector<64x128xi1>, vector<64x128xf32>
    %132 = arith.addf %121, %131 : vector<64x128xf32>
    %133 = vector.extract_strided_slice %15 {offsets = [5, 0], sizes = [1, 128], strides = [1, 1]} : vector<8x128xi32> to vector<1x128xi32>
    %134 = vector.shape_cast %133 : vector<1x128xi32> to vector<128xi32>
    %135 = vector.shape_cast %134 : vector<128xi32> to vector<1x128xi32>
    %136 = vector.broadcast %135 : vector<1x128xi32> to vector<64x128xi32>
    %137 = arith.cmpi eq, %16, %136 : vector<64x128xi32>
    %cst_24 = arith.constant 0.000000e+00 : f32
    %138 = vector.broadcast %123 : f32 to vector<64x128xf32>
    %139 = vector.broadcast %cst_24 : f32 to vector<64x128xf32>
    %140 = arith.select %137, %138, %139 : vector<64x128xi1>, vector<64x128xf32>
    %141 = arith.addf %132, %140 : vector<64x128xf32>
    %c6 = arith.constant 6 : index
    %142 = memref.load %arg1[%c6] : memref<8xf32, #tpu.memory_space<smem>>
    %c6_25 = arith.constant 6 : index
    %143 = memref.load %arg2[%c6_25] : memref<8xf32, #tpu.memory_space<smem>>
    %144 = vector.extract_strided_slice %7 {offsets = [6, 0], sizes = [1, 128], strides = [1, 1]} : vector<8x128xi32> to vector<1x128xi32>
    %145 = vector.shape_cast %144 : vector<1x128xi32> to vector<128xi32>
    %146 = vector.shape_cast %145 : vector<128xi32> to vector<1x128xi32>
    %147 = vector.broadcast %146 : vector<1x128xi32> to vector<64x128xi32>
    %148 = arith.cmpi eq, %16, %147 : vector<64x128xi32>
    %cst_26 = arith.constant 0.000000e+00 : f32
    %149 = vector.broadcast %142 : f32 to vector<64x128xf32>
    %150 = vector.broadcast %cst_26 : f32 to vector<64x128xf32>
    %151 = arith.select %148, %149, %150 : vector<64x128xi1>, vector<64x128xf32>
    %152 = arith.addf %141, %151 : vector<64x128xf32>
    %153 = vector.extract_strided_slice %15 {offsets = [6, 0], sizes = [1, 128], strides = [1, 1]} : vector<8x128xi32> to vector<1x128xi32>
    %154 = vector.shape_cast %153 : vector<1x128xi32> to vector<128xi32>
    %155 = vector.shape_cast %154 : vector<128xi32> to vector<1x128xi32>
    %156 = vector.broadcast %155 : vector<1x128xi32> to vector<64x128xi32>
    %157 = arith.cmpi eq, %16, %156 : vector<64x128xi32>
    %cst_27 = arith.constant 0.000000e+00 : f32
    %158 = vector.broadcast %143 : f32 to vector<64x128xf32>
    %159 = vector.broadcast %cst_27 : f32 to vector<64x128xf32>
    %160 = arith.select %157, %158, %159 : vector<64x128xi1>, vector<64x128xf32>
    %161 = arith.addf %152, %160 : vector<64x128xf32>
    %c7 = arith.constant 7 : index
    %162 = memref.load %arg1[%c7] : memref<8xf32, #tpu.memory_space<smem>>
    %c7_28 = arith.constant 7 : index
    %163 = memref.load %arg2[%c7_28] : memref<8xf32, #tpu.memory_space<smem>>
    %164 = vector.extract_strided_slice %7 {offsets = [7, 0], sizes = [1, 128], strides = [1, 1]} : vector<8x128xi32> to vector<1x128xi32>
    %165 = vector.shape_cast %164 : vector<1x128xi32> to vector<128xi32>
    %166 = vector.shape_cast %165 : vector<128xi32> to vector<1x128xi32>
    %167 = vector.broadcast %166 : vector<1x128xi32> to vector<64x128xi32>
    %168 = arith.cmpi eq, %16, %167 : vector<64x128xi32>
    %cst_29 = arith.constant 0.000000e+00 : f32
    %169 = vector.broadcast %162 : f32 to vector<64x128xf32>
    %170 = vector.broadcast %cst_29 : f32 to vector<64x128xf32>
    %171 = arith.select %168, %169, %170 : vector<64x128xi1>, vector<64x128xf32>
    %172 = arith.addf %161, %171 : vector<64x128xf32>
    %173 = vector.extract_strided_slice %15 {offsets = [7, 0], sizes = [1, 128], strides = [1, 1]} : vector<8x128xi32> to vector<1x128xi32>
    %174 = vector.shape_cast %173 : vector<1x128xi32> to vector<128xi32>
    %175 = vector.shape_cast %174 : vector<128xi32> to vector<1x128xi32>
    %176 = vector.broadcast %175 : vector<1x128xi32> to vector<64x128xi32>
    %177 = arith.cmpi eq, %16, %176 : vector<64x128xi32>
    %cst_30 = arith.constant 0.000000e+00 : f32
    %178 = vector.broadcast %163 : f32 to vector<64x128xf32>
    %179 = vector.broadcast %cst_30 : f32 to vector<64x128xf32>
    %180 = arith.select %177, %178, %179 : vector<64x128xi1>, vector<64x128xf32>
    %181 = arith.addf %172, %180 : vector<64x128xf32>
    %c0_31 = arith.constant 0 : index
    %c0_32 = arith.constant 0 : index
    %182 = vector.load %arg5[%c0_31, %c0_32] : memref<64x64xf32, #tpu.memory_space<vmem>>, vector<64x64xf32>
    %cst_33 = arith.constant dense<0.000000e+00> : vector<64x128xf32>
    %183 = tpu.matmul %182, %181, %cst_33 {dimension_numbers = #tpu.dot_dimension_numbers<[1], [0], [0], [1], [0, 0, 1, 1], [], []>} : vector<64x64xf32>, vector<64x128xf32>, vector<64x128xf32> -> vector<64x128xf32>
    %c0_34 = arith.constant 0 : index
    %c0_35 = arith.constant 0 : index
    %184 = vector.load %arg6[%c0_34, %c0_35] : memref<64x128xf32, #tpu.memory_space<vmem>>, vector<64x128xf32>
    tpu.vector_store %arg6[%c0_34, %c0_35], %183 {strides = array<i32>} : memref<64x128xf32, #tpu.memory_space<vmem>>, vector<64x128xf32>,
    return
  }
  func.func @transform_0(%arg0: i32) -> i32 {
    %c0_i32 = arith.constant 0 : i32
    %c0_i32_0 = arith.constant 0 : i32
    return %c0_i32 : i32
  }
  func.func @transform_1(%arg0: i32) -> i32 {
    %c0_i32 = arith.constant 0 : i32
    %c0_i32_0 = arith.constant 0 : i32
    return %c0_i32 : i32
  }
  func.func @transform_2(%arg0: i32) -> (i32, i32) {
    %c0_i32 = arith.constant 0 : i32
    %c0_i32_0 = arith.constant 0 : i32
    return %c0_i32, %arg0 : i32, i32
  }
  func.func @transform_3(%arg0: i32) -> (i32, i32) {
    %c0_i32 = arith.constant 0 : i32
    %c0_i32_0 = arith.constant 0 : i32
    return %c0_i32, %arg0 : i32, i32
  }
  func.func @transform_4(%arg0: i32) -> (i32, i32) {
    %c0_i32 = arith.constant 0 : i32
    %c0_i32_0 = arith.constant 0 : i32
    %c0_i32_1 = arith.constant 0 : i32
    return %c0_i32, %c0_i32_0 : i32, i32
  }
  func.func @transform_5(%arg0: i32) -> (i32, i32) {
    %c0_i32 = arith.constant 0 : i32
    %c0_i32_0 = arith.constant 0 : i32
    return %c0_i32, %arg0 : i32, i32
  }
}

</mosaic_0001>

<bundles_post_ra>
// kernel: time_encoder_forward.1
= control target key start
LH: loop header
LB: loop body
LE: loop exit
PB: predicated region body
PF: predicated region fallthrough
CT: control target
= control target key end

     0   :  { %10 = vsyncpa [#allocation3], 0  ;;  %s1400_s0 = inlined_call_operand.vmem [shape: f32[8], index: 0, kind: input, shape index: {}]   ;;  %s1401_s1 = inlined_call_operand.vmem [shape: f32[8], index: 1, kind: input, shape index: {}]   ;;  %s1402_s2 = inlined_call_operand.vmem [shape: f32[8,128], index: 2, kind: input, shape index: {}]   ;;  %s1403_s3 = inlined_call_operand.vmem [shape: f32[8,128], index: 3, kind: input, shape index: {}]   ;;  %s1404_s4 = inlined_call_operand.vmem [shape: f32[64,64], index: 4, kind: input, shape index: {}]   ;;  %s1405_s5 = inlined_call_operand.vmem [shape: f32[64,128], index: 5, kind: output, shape index: {}]  }
   0x1   :  { %s17_s20 = sshll.u32 %s1400_s0, 4  ;;  %s18_s20 = int_to_ptr.vmem [resolvable:$true] %s17_s20 }
   0x2   :  { %11 = vsyncpa [#allocation5], 0  ;;  %s26_s23 = sshll.u32 %s1401_s1, 4  ;;  %s691_s24 = smov [#allocation2]   ;;  %s27_s23 = int_to_ptr.vmem [resolvable:$true] %s26_s23 }
   0x3   :  { %20 = dma.vmem_to_smem %s18_s20, 16, %s691_s24, [#allocation3]  }
   0x4   :  { %s692_s25 = smov [#allocation4]  }
   0x5   :  { %29 = dma.vmem_to_smem %s27_s23, 16, %s692_s25, [#allocation5]  }
   0x6   :  { %687 = dma.done.wait [#allocation3], 16  }
   0x7   :  { %688 = vsyncadd [#allocation3], 4294967280 }
   0x8   :  { %689 = dma.done.wait [#allocation5], 16  }
   0x9   :  { %690 = vsyncadd [#allocation5], 4294967280 }
   0xa   :  { %44 = sfence }
   0xb   :  { %v45_v0 = vld [vmem:[%s1402_s2] sm:$0xff]  ;;  %s84_s1 = sld [smem:[#allocation2]]  ;;  %v59_v5 = vlaneseq  ;;  %v693_v55 = vmov 0.0  }
   0xc   :  { %v52_v1 = vld [vmem:[%s1403_s3] sm:$0xff]  ;;  %v46_v2 = vmul.f32 48.0, %v45_v0  ;;  %s85_s29 = sld [smem:[#allocation4]] }
   0xd   :  { %vm655_vm0 = vcmp.lt.s32.totalorder %v52_v1, 0  ;;  %v656_v3 = vceil.f32 %v52_v1  ;;  %v657_v4 = vfloor.f32 %v52_v1  ;;  %s604_s30 = sld [smem:[#allocation2 + $0x1]]  ;;  %v736_v12 = vshrl.u32 %v59_v5, 7 }
   0xe   :  { %vm650_vm1 = vcmp.lt.s32.totalorder %v46_v2, 0  ;;  %v651_v6 = vceil.f32 %v46_v2  ;;  %v652_v7 = vfloor.f32 %v46_v2  ;;  %s605_s6 = sld [smem:[#allocation4 + $0x1]] }
   0xf   :  { %v658_v8 = vsel %vm655_vm0, %v656_v3, %v657_v4  ;;  %s738_s2 = sld [smem:[#allocation2 + $0x2]]  ;;  %v747_v17 = vadd.s32 56, %v736_v12  ;;  %v786_v29 = vadd.s32 48, %v736_v12  ;;  %v869_v57 = vadd.s32 40, %v736_v12 }
  0x10   :  { %v659_v9 = vcvt.f32.s32 %v658_v8  ;;  %v653_v10 = vsel %vm650_vm1, %v651_v6, %v652_v7  ;;  %s740_s3 = sld [smem:[#allocation4 + $0x2]]  ;;  %v872_v58 = vadd.s32 32, %v736_v12 }
  0x11   :  { %v654_v11 = vcvt.f32.s32 %v653_v10  ;;  %s742_s7 = sld [smem:[#allocation2 + $0x3]]  ;;  %v753_v19 = vstv %s84_s1  ;;  %vm74_vm12 = vcmp.eq.s32.totalorder %v786_v29, 55 }
  0x12   :  { %vm54_vm2 = vcmp.gt.s32.totalorder %v659_v9, 0  ;;  %s749_s8 = sld [smem:[#allocation4 + $0x3]]  ;;  %v755_v20 = vstv %s85_s29  ;;  %v82_v56 = vsel %vm74_vm12, 1.0, %v693_v55 }
  0x13   :  { %v55_v13 = vsel %vm54_vm2, %v659_v9, 0  ;;  %vm48_vm3 = vcmp.gt.s32.totalorder %v654_v11, 0  ;;  %v757_v21 = vstv %s604_s30  ;;  %s759_s9 = sld [smem:[#allocation2 + $0x4]] }
  0x14   :  { %vm56_vm4 = vcmp.lt.s32.totalorder %v55_v13, 6  ;;  %v49_v14 = vsel %vm48_vm3, %v654_v11, 0  ;;  %s773_s10 = sld [smem:[#allocation4 + $0x4]]  ;;  %v775_v26 = vstv %s605_s6 }
  0x15   :  { %v57_v15 = vsel %vm56_vm4, %v55_v13, 6  ;;  %vm50_vm5 = vcmp.lt.s32.totalorder %v49_v14, 47  ;;  %s783_s11 = sld [smem:[#allocation2 + $0x5]]  ;;  %v805_v35 = vstv %s738_s2 }
  0x16   :  { %v744_v16 = vadd.s32 48, %v57_v15  ;;  %v751_v18 = vsel %vm50_vm5, %v49_v14, 47  ;;  %v811_v37 = vstv %s740_s3  ;;  %s822_s12 = sld [smem:[#allocation4 + $0x5]] }
  0x17   :  { %v762_v22 = vperm.slane %v751_v18, 0  ;;  %v768_v24 = vperm.slane %v751_v18, 1  ;;  %v778_v27 = vperm.slane %v751_v18, 2  ;;  %v800_v33 = vperm.slane %v751_v18, 3  ;;  %s614_s13 = sld [smem:[#allocation2 + $0x6]] }
  0x18   :  { %v765_v23 = vperm.slane %v744_v16, 0  ;;  %v771_v25 = vperm.slane %v744_v16, 1  ;;  %v781_v28 = vperm.slane %v744_v16, 2  ;;  %v814_v38 = vperm.slane %v744_v16, 3  ;;  %s858_s14 = sld [smem:[#allocation4 + $0x6]] }
  0x19   :  { %vm94_vm6 = vcmp.eq.s32.totalorder %v747_v17, %v762_v22  ;;  %vm148_vm8 = vcmp.eq.s32.totalorder %v747_v17, %v768_v24  ;;  %vm202_vm10 = vcmp.eq.s32.totalorder %v747_v17, %v778_v27  ;;  %v817_v40 = vstv %s742_s7  ;;  %s864_s15 = sld [smem:[#allocation2 + $0x7]] }
  0x1a   :  { %vm120_vm7 = vcmp.eq.s32.totalorder %v747_v17, %v765_v23  ;;  %vm174_vm9 = vcmp.eq.s32.totalorder %v747_v17, %v771_v25  ;;  %v103_v30 = vsel %vm94_vm6, %v753_v19, 0.0  ;;  %v157_v32 = vsel %vm148_vm8, %v757_v21, 0.0  ;;  %s617_s16 = sld [smem:[#allocation4 + $0x7]] }
  0x1b   :  { %v129_v31 = vsel %vm120_vm7, %v755_v20, 0.0  ;;  %v183_v36 = vsel %vm174_vm9, %v775_v26, 0.0  ;;  %vm228_vm11 = vcmp.eq.s32.totalorder %v747_v17, %v781_v28  ;;  %v820_v41 = vperm.slane %v751_v18, 4 }
  0x1c   :  { %v137_v34 = vadd.f32 %v129_v31, %v103_v30  ;;  %v211_v42 = vsel %vm202_vm10, %v805_v35, 0.0  ;;  %vm256_vm13 = vcmp.eq.s32.totalorder %v747_v17, %v800_v33  ;;  %v829_v43 = vperm.slane %v744_v16, 4 }
  0x1d   :  { %v832_v44 = vperm.slane %v751_v18, 5  ;;  %v237_v46 = vsel %vm228_vm11, %v811_v37, 0.0  ;;  %v836_v47 = vstv %s749_s8  ;;  %v839_v48 = vstv %s759_s9 }
  0x1e   :  { %v165_v39 = vadd.f32 %v157_v32, %v137_v34  ;;  %vm282_vm14 = vcmp.eq.s32.totalorder %v747_v17, %v814_v38  ;;  %vm310_vm15 = vcmp.eq.s32.totalorder %v747_v17, %v820_v41  ;;  %v846_v49 = vstv %s773_s10 }
  0x1f   :  { %v849_v50 = vstv %s783_s11  ;;  %vm336_vm0 = vcmp.eq.s32.totalorder %v747_v17, %v829_v43  ;;  %vm364_vm1 = vcmp.eq.s32.totalorder %v747_v17, %v832_v44  ;;  %v856_v52 = vperm.slane %v744_v16, 5 }
  0x20   :  { %v191_v45 = vadd.f32 %v183_v36, %v165_v39  ;;  %v265_v53 = vsel %vm256_vm13, %v817_v40, 0.0  ;;  %v291_v59 = vsel %vm282_vm14, %v836_v47, 0.0  ;;  %v319_v60 = vsel %vm310_vm15, %v839_v48, 0.0 }
  0x21   :  { %v345_v61 = vsel %vm336_vm0, %v846_v49, 0.0  ;;  %v373_v62 = vsel %vm364_vm1, %v849_v50, 0.0  ;;  %vm390_vm2 = vcmp.eq.s32.totalorder %v747_v17, %v856_v52  ;;  %v887_v0 = vstv %s822_s12 }
  0x22   :  { %v219_v51 = vadd.f32 %v211_v42, %v191_v45  ;;  %v890_v1 = vperm.slane %v751_v18, 6  ;;  %v892_v2 = vstv %s614_s13  ;;  %v895_v3 = vperm.slane %v744_v16, 6 }
  0x23   :  { %v898_v4 = vperm.slane %v751_v18, 7  ;;  %vm93_vm3 = vcmp.eq.s32.totalorder %v786_v29, %v762_v22  ;;  %v903_v6 = vperm.slane %v744_v16, 7  ;;  %vm119_vm4 = vcmp.eq.s32.totalorder %v786_v29, %v765_v23 }
  0x24   :  { %v245_v54 = vadd.f32 %v237_v46, %v219_v51  ;;  %v102_v7 = vsel %vm93_vm3, %v753_v19, 0.0  ;;  %v128_v9 = vsel %vm119_vm4, %v755_v20, 0.0  ;;  %vm147_vm5 = vcmp.eq.s32.totalorder %v786_v29, %v768_v24 }
  0x25   :  { %v110_v8 = vadd.f32 %v102_v7, %v82_v56  ;;  %vm173_vm6 = vcmp.eq.s32.totalorder %v786_v29, %v771_v25  ;;  %v399_v11 = vsel %vm390_vm2, %v887_v0, 0.0  ;;  %v918_v13 = vstv %s858_s14 }
  0x26   :  { %v273_v63 = vadd.f32 %v265_v53, %v245_v54  ;;  %v156_v14 = vsel %vm147_vm5, %v757_v21, 0.0  ;;  %vm418_vm7 = vcmp.eq.s32.totalorder %v747_v17, %v890_v1  ;;  %vm444_vm8 = vcmp.eq.s32.totalorder %v747_v17, %v895_v3 }
  0x27   :  { %v136_v15 = vadd.f32 %v128_v9, %v110_v8  ;;  %vm201_vm9 = vcmp.eq.s32.totalorder %v786_v29, %v778_v27  ;;  %vm472_vm10 = vcmp.eq.s32.totalorder %v747_v17, %v898_v4  ;;  %v930_v18 = vstv %s864_s15 }
  0x28   :  { %v299_v5 = vadd.f32 %v291_v59, %v273_v63  ;;  %v182_v30 = vsel %vm173_vm6, %v775_v26, 0.0  ;;  %vm498_vm11 = vcmp.eq.s32.totalorder %v747_v17, %v903_v6  ;;  %v935_v31 = vstv %s617_s16 }
  0x29   :  { %v164_v32 = vadd.f32 %v156_v14, %v136_v15  ;;  %vm227_vm12 = vcmp.eq.s32.totalorder %v786_v29, %v781_v28  ;;  %v210_v36 = vsel %vm201_vm9, %v805_v35, 0.0  ;;  %vm255_vm13 = vcmp.eq.s32.totalorder %v786_v29, %v800_v33 }
  0x2a   :  { %v327_v10 = vadd.f32 %v319_v60, %v299_v5  ;;  %vm281_vm14 = vcmp.eq.s32.totalorder %v786_v29, %v814_v38  ;;  %v427_v39 = vsel %vm418_vm7, %v892_v2, 0.0  ;;  %v453_v42 = vsel %vm444_vm8, %v918_v13, 0.0 }
  0x2b   :  { %v190_v45 = vadd.f32 %v182_v30, %v164_v32  ;;  %vm309_vm15 = vcmp.eq.s32.totalorder %v786_v29, %v820_v41  ;;  %v481_v51 = vsel %vm472_vm10, %v930_v18, 0.0  ;;  %v507_v53 = vsel %vm498_vm11, %v935_v31, 0.0 }
  0x2c   :  { %v353_v16 = vadd.f32 %v345_v61, %v327_v10  ;;  %v236_v54 = vsel %vm227_vm12, %v811_v37, 0.0  ;;  %v264_v56 = vsel %vm255_vm13, %v817_v40, 0.0  ;;  %v290_v59 = vsel %vm281_vm14, %v836_v47, 0.0 }
  0x2d   :  { %v218_v55 = vadd.f32 %v210_v36, %v190_v45  ;;  %vm335_vm0 = vcmp.eq.s32.totalorder %v786_v29, %v829_v43  ;;  %v318_v61 = vsel %vm309_vm15, %v839_v48, 0.0  ;;  %vm363_vm1 = vcmp.eq.s32.totalorder %v786_v29, %v832_v44 }
  0x2e   :  { %v381_v34 = vadd.f32 %v373_v62, %v353_v16  ;;  %vm92_vm2 = vcmp.eq.s32.totalorder %v869_v57, %v762_v22  ;;  %vm118_vm3 = vcmp.eq.s32.totalorder %v869_v57, %v765_v23  ;;  %vm146_vm4 = vcmp.eq.s32.totalorder %v869_v57, %v768_v24 }
  0x2f   :  { %v244_v17 = vadd.f32 %v236_v54, %v218_v55  ;;  %v101_v62 = vsel %vm92_vm2, %v753_v19, 0.0  ;;  %v127_v5 = vsel %vm118_vm3, %v755_v20, 0.0  ;;  %v155_v7 = vsel %vm146_vm4, %v757_v21, 0.0 }
  0x30   :  { %v407_v46 = vadd.f32 %v399_v11, %v381_v34  ;;  %vm172_vm5 = vcmp.eq.s32.totalorder %v869_v57, %v771_v25  ;;  %v344_v9 = vsel %vm335_vm0, %v846_v49, 0.0  ;;  %v135_v10 = vadd.f32 %v127_v5, %v101_v62 }
  0x31   :  { %v272_v8 = vadd.f32 %v264_v56, %v244_v17  ;;  %vm200_vm6 = vcmp.eq.s32.totalorder %v869_v57, %v778_v27  ;;  %v372_v14 = vsel %vm363_vm1, %v849_v50, 0.0  ;;  %vm389_vm7 = vcmp.eq.s32.totalorder %v786_v29, %v856_v52 }
  0x32   :  { %v435_v60 = vadd.f32 %v427_v39, %v407_v46  ;;  %v181_v15 = vsel %vm172_vm5, %v775_v26, 0.0  ;;  %vm417_vm8 = vcmp.eq.s32.totalorder %v786_v29, %v890_v1  ;;  %v163_v30 = vadd.f32 %v155_v7, %v135_v10 }
  0x33   :  { %v298_v16 = vadd.f32 %v290_v59, %v272_v8  ;;  %vm226_vm9 = vcmp.eq.s32.totalorder %v869_v57, %v781_v28  ;;  %vm443_vm10 = vcmp.eq.s32.totalorder %v786_v29, %v895_v3  ;;  %vm471_vm11 = vcmp.eq.s32.totalorder %v786_v29, %v898_v4 }
  0x34   :  { %v461_v63 = vadd.f32 %v453_v42, %v435_v60  ;;  %v209_v34 = vsel %vm200_vm6, %v805_v35, 0.0  ;;  %vm497_vm12 = vcmp.eq.s32.totalorder %v786_v29, %v903_v6  ;;  %v189_v39 = vadd.f32 %v181_v15, %v163_v30 }
  0x35   :  { %v326_v36 = vadd.f32 %v318_v61, %v298_v16  ;;  %vm254_vm13 = vcmp.eq.s32.totalorder %v869_v57, %v800_v33  ;;  %v398_v42 = vsel %vm389_vm7, %v887_v0, 0.0  ;;  %v235_v45 = vsel %vm226_vm9, %v811_v37, 0.0 }
  0x36   :  { %v489_v11 = vadd.f32 %v481_v51, %v461_v63  ;;  %vm280_vm14 = vcmp.eq.s32.totalorder %v869_v57, %v814_v38  ;;  %vm308_vm15 = vcmp.eq.s32.totalorder %v869_v57, %v820_v41  ;;  %v426_v51 = vsel %vm417_vm8, %v892_v2, 0.0 }
  0x37   :  { %v352_v46 = vadd.f32 %v344_v9, %v326_v36  ;;  %v217_v54 = vadd.f32 %v209_v34, %v189_v39  ;;  %v480_v55 = vsel %vm471_vm11, %v930_v18, 0.0  ;;  %v506_v56 = vsel %vm497_vm12, %v935_v31, 0.0 }
  0x38   :  { %v515_v32 = vadd.f32 %v507_v53, %v489_v11  ;;  %v452_v53 = vsel %vm443_vm10, %v918_v13, 0.0  ;;  %v263_v59 = vsel %vm254_vm13, %v817_v40, 0.0  ;;  %vm334_vm0 = vcmp.eq.s32.totalorder %v869_v57, %v829_v43 }
  0x39   :  { %v380_v60 = vadd.f32 %v372_v14, %v352_v46  ;;  %v243_v61 = vadd.f32 %v235_v45, %v217_v54  ;;  %v289_v17 = vsel %vm280_vm14, %v836_v47, 0.0  ;;  %v317_v62 = vsel %vm308_vm15, %v839_v48, 0.0 }
  0x3a   :  { %627 = vmatpush.msra.mxu2 %v515_v32  ;;  %628 = vmatpush.msra.mxu3 %v515_v32  ;;  %vm362_vm1 = vcmp.eq.s32.totalorder %v869_v57, %v832_v44  ;;  %vm91_vm2 = vcmp.eq.s32.totalorder %v872_v58, %v762_v22  ;;  %vm117_vm3 = vcmp.eq.s32.totalorder %v872_v58, %v765_v23  ;;  %v343_v15 = vsel %vm334_vm0, %v846_v49, 0.0 }
  0x3b   :  { %557 = vmatpush.msra.mxu0 %v515_v32  ;;  %626 = vmatpush.msra.mxu1 %v515_v32  ;;  %vm145_vm4 = vcmp.eq.s32.totalorder %v872_v58, %v768_v24  ;;  %v406_v29 = vadd.f32 %v398_v42, %v380_v60  ;;  %v271_v63 = vadd.f32 %v263_v59, %v243_v61  ;;  %v100_v5 = vsel %vm91_vm2, %v753_v19, 0.0 }
  0x3c   :  { %v126_v7 = vsel %vm117_vm3, %v755_v20, 0.0  ;;  %v154_v9 = vsel %vm145_vm4, %v757_v21, 0.0  ;;  %vm171_vm5 = vcmp.eq.s32.totalorder %v872_v58, %v771_v25  ;;  %vm199_vm6 = vcmp.eq.s32.totalorder %v872_v58, %v778_v27 }
  0x3d   :  { %v134_v8 = vadd.f32 %v126_v7, %v100_v5  ;;  %v434_v10 = vadd.f32 %v426_v51, %v406_v29  ;;  %v297_v11 = vadd.f32 %v289_v17, %v271_v63  ;;  %vm388_vm7 = vcmp.eq.s32.totalorder %v869_v57, %v856_v52 }
  0x3e   :  { %v180_v14 = vsel %vm171_vm5, %v775_v26, 0.0  ;;  %vm416_vm8 = vcmp.eq.s32.totalorder %v869_v57, %v890_v1  ;;  %vm225_vm9 = vcmp.eq.s32.totalorder %v872_v58, %v781_v28  ;;  %v208_v34 = vsel %vm199_vm6, %v805_v35, 0.0 }
  0x3f   :  { %v162_v16 = vadd.f32 %v154_v9, %v134_v8  ;;  %v460_v30 = vadd.f32 %v452_v53, %v434_v10  ;;  %v325_v32 = vadd.f32 %v317_v62, %v297_v11  ;;  %vm253_vm10 = vcmp.eq.s32.totalorder %v872_v58, %v800_v33 }
  0x40   :  { %v371_v36 = vsel %vm362_vm1, %v849_v50, 0.0  ;;  %v397_v39 = vsel %vm388_vm7, %v887_v0, 0.0  ;;  %vm442_vm11 = vcmp.eq.s32.totalorder %v869_v57, %v895_v3  ;;  %vm470_vm12 = vcmp.eq.s32.totalorder %v869_v57, %v898_v4 }
  0x41   :  { %v188_v42 = vadd.f32 %v180_v14, %v162_v16  ;;  %v488_v45 = vadd.f32 %v480_v55, %v460_v30  ;;  %v351_v46 = vadd.f32 %v343_v15, %v325_v32  ;;  %v234_v51 = vsel %vm225_vm9, %v811_v37, 0.0 }
  0x42   :  { %vm496_vm13 = vcmp.eq.s32.totalorder %v869_v57, %v903_v6  ;;  %v262_v54 = vsel %vm253_vm10, %v817_v40, 0.0  ;;  %vm279_vm14 = vcmp.eq.s32.totalorder %v872_v58, %v814_v38  ;;  %vm307_vm15 = vcmp.eq.s32.totalorder %v872_v58, %v820_v41 }
  0x43   :  { %v216_v53 = vadd.f32 %v208_v34, %v188_v42  ;;  %v514_v59 = vadd.f32 %v506_v56, %v488_v45  ;;  %v379_v60 = vadd.f32 %v371_v36, %v351_v46  ;;  %vm333_vm0 = vcmp.eq.s32.totalorder %v872_v58, %v829_v43 }
  0x44   :  { %v425_v55 = vsel %vm416_vm8, %v892_v2, 0.0  ;;  %v451_v61 = vsel %vm442_vm11, %v918_v13, 0.0  ;;  %v479_v56 = vsel %vm470_vm12, %v930_v18, 0.0  ;;  %v505_v29 = vsel %vm496_vm13, %v935_v31, 0.0 }
  0x45   :  { %v242_v17 = vadd.f32 %v234_v51, %v216_v53  ;;  %630 = vmatpush.msra.mxu2 %v514_v59  ;;  %631 = vmatpush.msra.mxu3 %v514_v59  ;;  %v405_v62 = vadd.f32 %v397_v39, %v379_v60  ;;  %v288_v63 = vsel %vm279_vm14, %v836_v47, 0.0  ;;  %v316_v7 = vsel %vm307_vm15, %v839_v48, 0.0 }
  0x46   :  { %v342_v8 = vsel %vm333_vm0, %v846_v49, 0.0  ;;  %558 = vmatpush.msra.mxu0 %v514_v59  ;;  %629 = vmatpush.msra.mxu1 %v514_v59  ;;  %v1087_v9 = vadd.s32 24, %v736_v12  ;;  %vm361_vm1 = vcmp.eq.s32.totalorder %v872_v58, %v832_v44  ;;  %vm387_vm2 = vcmp.eq.s32.totalorder %v872_v58, %v856_v52 }
  0x47   :  { %v270_v5 = vadd.f32 %v262_v54, %v242_v17  ;;  %v433_v10 = vadd.f32 %v425_v55, %v405_v62  ;;  %vm415_vm3 = vcmp.eq.s32.totalorder %v872_v58, %v890_v1  ;;  %v370_v36 = vsel %vm361_vm1, %v849_v50, 0.0 }
  0x48   :  { %vm90_vm4 = vcmp.eq.s32.totalorder %v1087_v9, %v762_v22  ;;  %vm116_vm5 = vcmp.eq.s32.totalorder %v1087_v9, %v765_v23  ;;  %vm144_vm6 = vcmp.eq.s32.totalorder %v1087_v9, %v768_v24  ;;  %vm170_vm7 = vcmp.eq.s32.totalorder %v1087_v9, %v771_v25 }
  0x49   :  { %v296_v57 = vadd.f32 %v288_v63, %v270_v5  ;;  %v459_v11 = vadd.f32 %v451_v61, %v433_v10  ;;  %v99_v14 = vsel %vm90_vm4, %v753_v19, 0.0  ;;  %v125_v15 = vsel %vm116_vm5, %v755_v20, 0.0 }
  0x4a   :  { %v153_v16 = vsel %vm144_vm6, %v757_v21, 0.0  ;;  %v133_v32 = vadd.f32 %v125_v15, %v99_v14  ;;  %vm198_vm8 = vcmp.eq.s32.totalorder %v1087_v9, %v778_v27  ;;  %v179_v39 = vsel %vm170_vm7, %v775_v26, 0.0 }
  0x4b   :  { %v324_v30 = vadd.f32 %v316_v7, %v296_v57  ;;  %v487_v34 = vadd.f32 %v479_v56, %v459_v11  ;;  %v396_v45 = vsel %vm387_vm2, %v887_v0, 0.0  ;;  %vm224_vm9 = vcmp.eq.s32.totalorder %v1087_v9, %v781_v28 }
  0x4c   :  { %v161_v46 = vadd.f32 %v153_v16, %v133_v32  ;;  %v424_v53 = vsel %vm415_vm3, %v892_v2, 0.0  ;;  %vm441_vm10 = vcmp.eq.s32.totalorder %v872_v58, %v895_v3  ;;  %v207_v54 = vsel %vm198_vm8, %v805_v35, 0.0 }
  0x4d   :  { %v350_v42 = vadd.f32 %v342_v8, %v324_v30  ;;  %v513_v51 = vadd.f32 %v505_v29, %v487_v34  ;;  %vm469_vm11 = vcmp.eq.s32.totalorder %v872_v58, %v898_v4  ;;  %vm252_vm12 = vcmp.eq.s32.totalorder %v1087_v9, %v800_v33 }
  0x4e   :  { %v187_v60 = vadd.f32 %v179_v39, %v161_v46  ;;  %vm495_vm13 = vcmp.eq.s32.totalorder %v872_v58, %v903_v6  ;;  %v233_v55 = vsel %vm224_vm9, %v811_v37, 0.0  ;;  %vm278_vm14 = vcmp.eq.s32.totalorder %v1087_v9, %v814_v38 }
  0x4f   :  { %v378_v59 = vadd.f32 %v370_v36, %v350_v42  ;;  %633 = vmatpush.msra.mxu2 %v513_v51  ;;  %634 = vmatpush.msra.mxu3 %v513_v51  ;;  %v1136_v61 = vadd.s32 16, %v736_v12  ;;  %vm306_vm15 = vcmp.eq.s32.totalorder %v1087_v9, %v820_v41  ;;  %v450_v56 = vsel %vm441_vm10, %v918_v13, 0.0 }
  0x50   :  { %v215_v62 = vadd.f32 %v207_v54, %v187_v60  ;;  %559 = vmatpush.msra.mxu0 %v513_v51  ;;  %632 = vmatpush.msra.mxu1 %v513_v51  ;;  %v478_v29 = vsel %vm469_vm11, %v930_v18, 0.0  ;;  %v261_v63 = vsel %vm252_vm12, %v817_v40, 0.0  ;;  %v504_v7 = vsel %vm495_vm13, %v935_v31, 0.0 }
  0x51   :  { %v404_v17 = vadd.f32 %v396_v45, %v378_v59  ;;  %v287_v10 = vsel %vm278_vm14, %v836_v47, 0.0  ;;  %v315_v57 = vsel %vm306_vm15, %v839_v48, 0.0  ;;  %vm332_vm0 = vcmp.eq.s32.totalorder %v1087_v9, %v829_v43 }
  0x52   :  { %v241_v8 = vadd.f32 %v233_v55, %v215_v62  ;;  %vm89_vm1 = vcmp.eq.s32.totalorder %v1136_v61, %v762_v22  ;;  %vm115_vm2 = vcmp.eq.s32.totalorder %v1136_v61, %v765_v23  ;;  %vm360_vm3 = vcmp.eq.s32.totalorder %v1087_v9, %v832_v44 }
  0x53   :  { %v432_v5 = vadd.f32 %v424_v53, %v404_v17  ;;  %v98_v14 = vsel %vm89_vm1, %v753_v19, 0.0  ;;  %v124_v15 = vsel %vm115_vm2, %v755_v20, 0.0  ;;  %vm143_vm4 = vcmp.eq.s32.totalorder %v1136_v61, %v768_v24 }
  0x54   :  { %v269_v11 = vadd.f32 %v261_v63, %v241_v8  ;;  %vm169_vm5 = vcmp.eq.s32.totalorder %v1136_v61, %v771_v25  ;;  %vm197_vm6 = vcmp.eq.s32.totalorder %v1136_v61, %v778_v27  ;;  %v132_v32 = vadd.f32 %v124_v15, %v98_v14 }
  0x55   :  { %v458_v58 = vadd.f32 %v450_v56, %v432_v5  ;;  %v152_v34 = vsel %vm143_vm4, %v757_v21, 0.0  ;;  %v341_v36 = vsel %vm332_vm0, %v846_v49, 0.0  ;;  %v369_v39 = vsel %vm360_vm3, %v849_v50, 0.0 }
  0x56   :  { %v295_v30 = vadd.f32 %v287_v10, %v269_v11  ;;  %vm386_vm7 = vcmp.eq.s32.totalorder %v1087_v9, %v856_v52  ;;  %v178_v42 = vsel %vm169_vm5, %v775_v26, 0.0  ;;  %v160_v51 = vadd.f32 %v152_v34, %v132_v32 }
  0x57   :  { %v486_v16 = vadd.f32 %v478_v29, %v458_v58  ;;  %vm223_vm8 = vcmp.eq.s32.totalorder %v1136_v61, %v781_v28  ;;  %vm414_vm9 = vcmp.eq.s32.totalorder %v1087_v9, %v890_v1  ;;  %vm440_vm10 = vcmp.eq.s32.totalorder %v1087_v9, %v895_v3 }
  0x58   :  { %v323_v46 = vadd.f32 %v315_v57, %v295_v30  ;;  %vm468_vm11 = vcmp.eq.s32.totalorder %v1087_v9, %v898_v4  ;;  %v206_v53 = vsel %vm197_vm6, %v805_v35, 0.0  ;;  %v186_v59 = vadd.f32 %v178_v42, %v160_v51 }
  0x59   :  { %v512_v45 = vadd.f32 %v504_v7, %v486_v16  ;;  %vm251_vm12 = vcmp.eq.s32.totalorder %v1136_v61, %v800_v33  ;;  %v395_v60 = vsel %vm386_vm7, %v887_v0, 0.0  ;;  %v232_v55 = vsel %vm223_vm8, %v811_v37, 0.0 }
  0x5a   :  { %v349_v54 = vadd.f32 %v341_v36, %v323_v46  ;;  %vm277_vm13 = vcmp.eq.s32.totalorder %v1136_v61, %v814_v38  ;;  %v1190_v17 = vadd.s32 8, %v736_v12  ;;  %v423_v56 = vsel %vm414_vm9, %v892_v2, 0.0 }
  0x5b   :  { %636 = vmatpush.msra.mxu2 %v512_v45  ;;  %637 = vmatpush.msra.mxu3 %v512_v45  ;;  %v214_v29 = vadd.f32 %v206_v53, %v186_v59  ;;  %vm305_vm14 = vcmp.eq.s32.totalorder %v1136_v61, %v820_v41  ;;  %v449_v63 = vsel %vm440_vm10, %v918_v13, 0.0  ;;  %v477_v5 = vsel %vm468_vm11, %v930_v18, 0.0 }
  0x5c   :  { %560 = vmatpush.msra.mxu0 %v512_v45  ;;  %635 = vmatpush.msra.mxu1 %v512_v45  ;;  %v377_v62 = vadd.f32 %v369_v39, %v349_v54  ;;  %vm494_vm15 = vcmp.eq.s32.totalorder %v1087_v9, %v903_v6  ;;  %v260_v7 = vsel %vm251_vm12, %v817_v40, 0.0  ;;  %vm87_vm0 = vcmp.eq.s32.totalorder %v736_v12, %v762_v22 }
  0x5d   :  { %v240_v10 = vadd.f32 %v232_v55, %v214_v29  ;;  %v286_v57 = vsel %vm277_vm13, %v836_v47, 0.0  ;;  %vm331_vm1 = vcmp.eq.s32.totalorder %v1136_v61, %v829_v43  ;;  %v314_v58 = vsel %vm305_vm14, %v839_v48, 0.0 }
  0x5e   :  { %v403_v8 = vadd.f32 %v395_v60, %v377_v62  ;;  %vm88_vm2 = vcmp.eq.s32.totalorder %v1190_v17, %v762_v22  ;;  %vm114_vm3 = vcmp.eq.s32.totalorder %v1190_v17, %v765_v23  ;;  %vm142_vm4 = vcmp.eq.s32.totalorder %v1190_v17, %v768_v24 }
  0x5f   :  { %v268_v14 = vadd.f32 %v260_v7, %v240_v10  ;;  %v97_v15 = vsel %vm88_vm2, %v753_v19, 0.0  ;;  %v123_v16 = vsel %vm114_vm3, %v755_v20, 0.0  ;;  %vm113_vm5 = vcmp.eq.s32.totalorder %v736_v12, %v765_v23 }
  0x60   :  { %v431_v11 = vadd.f32 %v423_v56, %v403_v8  ;;  %v131_v30 = vadd.f32 %v123_v16, %v97_v15  ;;  %v151_v32 = vsel %vm142_vm4, %v757_v21, 0.0  ;;  %vm168_vm6 = vcmp.eq.s32.totalorder %v1190_v17, %v771_v25 }
  0x61   :  { %vm196_vm7 = vcmp.eq.s32.totalorder %v1190_v17, %v778_v27  ;;  %v294_v36 = vadd.f32 %v286_v57, %v268_v14  ;;  %vm359_vm8 = vcmp.eq.s32.totalorder %v1136_v61, %v832_v44  ;;  %v177_v39 = vsel %vm168_vm6, %v775_v26, 0.0 }
  0x62   :  { %v457_v34 = vadd.f32 %v449_v63, %v431_v11  ;;  %v503_v42 = vsel %vm494_vm15, %v935_v31, 0.0  ;;  %v340_v45 = vsel %vm331_vm1, %v846_v49, 0.0  ;;  %v159_v46 = vadd.f32 %v151_v32, %v131_v30 }
  0x63   :  { %vm222_vm9 = vcmp.eq.s32.totalorder %v1190_v17, %v781_v28  ;;  %v322_v53 = vadd.f32 %v314_v58, %v294_v36  ;;  %vm385_vm10 = vcmp.eq.s32.totalorder %v1136_v61, %v856_v52  ;;  %v205_v54 = vsel %vm196_vm7, %v805_v35, 0.0 }
  0x64   :  { %v485_v51 = vadd.f32 %v477_v5, %v457_v34  ;;  %v368_v59 = vsel %vm359_vm8, %v849_v50, 0.0  ;;  %vm413_vm11 = vcmp.eq.s32.totalorder %v1136_v61, %v890_v1  ;;  %v185_v9 = vadd.f32 %v177_v39, %v159_v46 }
  0x65   :  { %vm250_vm12 = vcmp.eq.s32.totalorder %v1190_v17, %v800_v33  ;;  %v348_v55 = vadd.f32 %v340_v45, %v322_v53  ;;  %vm439_vm13 = vcmp.eq.s32.totalorder %v1136_v61, %v895_v3  ;;  %v231_v62 = vsel %vm222_vm9, %v811_v37, 0.0 }
  0x66   :  { %v511_v60 = vadd.f32 %v503_v42, %v485_v51  ;;  %v394_v56 = vsel %vm385_vm10, %v887_v0, 0.0  ;;  %vm467_vm14 = vcmp.eq.s32.totalorder %v1136_v61, %v898_v4  ;;  %v213_v29 = vadd.f32 %v205_v54, %v185_v9 }
  0x67   :  { %vm276_vm15 = vcmp.eq.s32.totalorder %v1190_v17, %v814_v38  ;;  %v376_v63 = vadd.f32 %v368_v59, %v348_v55  ;;  %v422_v5 = vsel %vm413_vm11, %v892_v2, 0.0  ;;  %v259_v7 = vsel %vm250_vm12, %v817_v40, 0.0 }
  0x68   :  { %639 = vmatpush.msra.mxu2 %v511_v60  ;;  %640 = vmatpush.msra.mxu3 %v511_v60  ;;  %v96_v8 = vsel %vm87_vm0, %v753_v19, 0.0  ;;  %v448_v10 = vsel %vm439_vm13, %v918_v13, 0.0  ;;  %vm493_vm1 = vcmp.eq.s32.totalorder %v1136_v61, %v903_v6  ;;  %v239_v57 = vadd.f32 %v231_v62, %v213_v29 }
  0x69   :  { %vm304_vm2 = vcmp.eq.s32.totalorder %v1190_v17, %v820_v41  ;;  %561 = vmatpush.msra.mxu0 %v511_v60  ;;  %v402_v58 = vadd.f32 %v394_v56, %v376_v63  ;;  %v476_v11 = vsel %vm467_vm14, %v930_v18, 0.0  ;;  %v285_v14 = vsel %vm276_vm15, %v836_v47, 0.0  ;;  %638 = vmatpush.msra.mxu1 %v511_v60 }
  0x6a   :  { %vm330_vm3 = vcmp.eq.s32.totalorder %v1190_v17, %v829_v43  ;;  %v267_v19 = vadd.f32 %v259_v7, %v239_v57  ;;  %v122_v22 = vsel %vm113_vm5, %v755_v20, 0.0  ;;  %vm141_vm0 = vcmp.eq.s32.totalorder %v736_v12, %v768_v24  ;;  %v519_v57 = vld [vmem:[%s1404_s4 + $0x18] sm:$0xff] }
  0x6b   :  { %vm167_vm4 = vcmp.eq.s32.totalorder %v736_v12, %v771_v25  ;;  %v430_v15 = vadd.f32 %v422_v5, %v402_v58  ;;  %v313_v16 = vsel %vm304_vm2, %v839_v48, 0.0  ;;  %v130_v30 = vadd.f32 %v122_v22, %v96_v8 }
  0x6c   :  { %v150_v32 = vsel %vm141_vm0, %v757_v21, 0.0  ;;  %v293_v34 = vadd.f32 %v285_v14, %v267_v19  ;;  %vm358_vm6 = vcmp.eq.s32.totalorder %v1190_v17, %v832_v44  ;;  %v176_v36 = vsel %vm167_vm4, %v775_v26, 0.0 }
  0x6d   :  { %vm195_vm5 = vcmp.eq.s32.totalorder %v736_v12, %v778_v27  ;;  %v456_v20 = vadd.f32 %v448_v10, %v430_v15  ;;  %v339_v23 = vsel %vm330_vm3, %v846_v49, 0.0  ;;  %v158_v24 = vadd.f32 %v150_v32, %v130_v30 }
  0x6e   :  { %vm221_vm7 = vcmp.eq.s32.totalorder %v736_v12, %v781_v28  ;;  %v502_v21 = vsel %vm493_vm1, %v935_v31, 0.0  ;;  %v321_v25 = vadd.f32 %v313_v16, %v293_v34  ;;  %vm384_vm8 = vcmp.eq.s32.totalorder %v1190_v17, %v856_v52 }
  0x6f   :  { %v204_v26 = vsel %vm195_vm5, %v805_v35, 0.0  ;;  %v484_v39 = vadd.f32 %v476_v11, %v456_v20  ;;  %v367_v27 = vsel %vm358_vm6, %v849_v50, 0.0  ;;  %v184_v42 = vadd.f32 %v176_v36, %v158_v24 }
  0x70   :  { %vm249_vm9 = vcmp.eq.s32.totalorder %v736_v12, %v800_v33  ;;  %v347_v45 = vadd.f32 %v339_v23, %v321_v25  ;;  %vm412_vm10 = vcmp.eq.s32.totalorder %v1190_v17, %v890_v1  ;;  %v230_v28 = vsel %vm221_vm7, %v811_v37, 0.0 }
  0x71   :  { %v510_v61 = vadd.f32 %v502_v21, %v484_v39  ;;  %v393_v46 = vsel %vm384_vm8, %v887_v0, 0.0  ;;  %v212_v51 = vadd.f32 %v204_v26, %v184_v42  ;;  %vm275_vm11 = vcmp.eq.s32.totalorder %v736_v12, %v814_v38 }
  0x72   :  { %v375_v35 = vadd.f32 %v367_v27, %v347_v45  ;;  %vm438_vm12 = vcmp.eq.s32.totalorder %v1190_v17, %v895_v3  ;;  %v258_v53 = vsel %vm249_vm9, %v817_v40, 0.0  ;;  %v421_v33 = vsel %vm412_vm10, %v892_v2, 0.0 }
  0x73   :  { %642 = vmatpush.msra.mxu2 %v510_v61  ;;  %643 = vmatpush.msra.mxu3 %v510_v61  ;;  %v238_v54 = vadd.f32 %v230_v28, %v212_v51  ;;  %vm303_vm13 = vcmp.eq.s32.totalorder %v736_v12, %v820_v41  ;;  %vm466_vm14 = vcmp.eq.s32.totalorder %v1190_v17, %v898_v4  ;;  %v284_v38 = vsel %vm275_vm11, %v836_v47, 0.0 }
  0x74   :  { %v401_v37 = vadd.f32 %v393_v46, %v375_v35  ;;  %562 = vmatpush.msra.mxu0 %v510_v61  ;;  %641 = vmatpush.msra.mxu1 %v510_v61  ;;  %v447_v59 = vsel %vm438_vm12, %v918_v13, 0.0  ;;  %vm329_vm15 = vcmp.eq.s32.totalorder %v736_v12, %v829_v43  ;;  %vm492_vm1 = vcmp.eq.s32.totalorder %v1190_v17, %v903_v6 }
  0x75   :  { %v266_v9 = vadd.f32 %v258_v53, %v238_v54  ;;  %v312_v41 = vsel %vm303_vm13, %v839_v48, 0.0  ;;  %v475_v60 = vsel %vm466_vm14, %v930_v18, 0.0  ;;  %vm357_vm2 = vcmp.eq.s32.totalorder %v736_v12, %v832_v44 }
  0x76   :  { %v429_v40 = vadd.f32 %v421_v33, %v401_v37  ;;  %v338_v62 = vsel %vm329_vm15, %v846_v49, 0.0  ;;  %v501_v56 = vsel %vm492_vm1, %v935_v31, 0.0  ;;  %vm383_vm3 = vcmp.eq.s32.totalorder %v736_v12, %v856_v52 }
  0x77   :  { %v292_v55 = vadd.f32 %v284_v38, %v266_v9  ;;  %v366_v17 = vsel %vm357_vm2, %v849_v50, 0.0  ;;  %vm411_vm0 = vcmp.eq.s32.totalorder %v736_v12, %v890_v1  ;;  %v392_v5 = vsel %vm383_vm3, %v887_v0, 0.0 }
  0x78   :  { %v455_v47 = vadd.f32 %v447_v59, %v429_v40  ;;  %vm437_vm4 = vcmp.eq.s32.totalorder %v736_v12, %v895_v3  ;;  %v420_v49 = vsel %vm411_vm0, %v892_v2, 0.0  ;;  %vm465_vm6 = vcmp.eq.s32.totalorder %v736_v12, %v898_v4  ;;  %v520_v2 = vld [vmem:[%s1404_s4 + $0x20] sm:$0xff]  ;;  %v522_v4 = vld [vmem:[%s1404_s4 + $0x30] sm:$0xff] }
  0x79   :  { %v320_v29 = vadd.f32 %v312_v41, %v292_v55  ;;  %v446_v50 = vsel %vm437_vm4, %v918_v13, 0.0  ;;  %vm491_vm5 = vcmp.eq.s32.totalorder %v736_v12, %v903_v6  ;;  %v474_v0 = vsel %vm465_vm6, %v930_v18, 0.0  ;;  %v516_v12 = vld [vmem:[%s1404_s4] sm:$0xff]  ;;  %v518_v6 = vld [vmem:[%s1404_s4 + $0x10] sm:$0xff]  ;;  %v521_v13 = vld [vmem:[%s1404_s4 + $0x28] sm:$0xff] }
  0x7a   :  { %v483_v43 = vadd.f32 %v475_v60, %v455_v47  ;;  %v500_v3 = vsel %vm491_vm5, %v935_v31, 0.0  ;;  %vm524_vm7 = vcmask 523264   ;;  %v523_v18 = vld [vmem:[%s1404_s4 + $0x38] sm:$0xff]  ;;  %v517_v31 = vld [vmem:[%s1404_s4 + $0x8] sm:$0xff] }
  0x7b   :  { %v346_v63 = vadd.f32 %v338_v62, %v320_v29 }
  0x7c   :  { %v509_v48 = vadd.f32 %v501_v56, %v483_v43 }
  0x7d   :  { %v374_v44 = vadd.f32 %v366_v17, %v346_v63 }
  0x7e   :  { %645 = vmatpush.msra.mxu2 %v509_v48  ;;  %646 = vmatpush.msra.mxu3 %v509_v48 }
  0x7f   :  { %v400_v7 = vadd.f32 %v392_v5, %v374_v44  ;;  %563 = vmatpush.msra.mxu0 %v509_v48  ;;  %644 = vmatpush.msra.mxu1 %v509_v48 }
  0x81   :  { %v428_v52 = vadd.f32 %v420_v49, %v400_v7 }
  0x83   :  { %v454_v1 = vadd.f32 %v446_v50, %v428_v52 }
  0x85   :  { %v482_v8 = vadd.f32 %v474_v0, %v454_v1 }
  0x87   :  { %v508_v10 = vadd.f32 %v500_v3, %v482_v8 }
  0x89   :  { %648 = vmatpush.msra.mxu2 %v508_v10  ;;  %649 = vmatpush.msra.mxu3 %v508_v10 }
  0x8a   :  { %622 = vmatmul.msk.f32.vlgmr.msra.gmra.mxu2 %vm524_vm7, %v520_v2  ;;  %624 = vmatmul.msk.f32.vlgmr.msra.gmra.mxu3 %vm524_vm7, %v522_v4 }
  0x8b   :  { %564 = vmatpush.msra.mxu0 %v508_v10  ;;  %647 = vmatpush.msra.mxu1 %v508_v10 }
  0x8c   :  { %618 = vmatmul.msk.f32.vlgmr.msra.gmra.mxu0 %vm524_vm7, %v516_v12  ;;  %620 = vmatmul.msk.f32.vlgmr.msra.gmra.mxu1 %vm524_vm7, %v518_v6 }
  0x92   :  { %623 = vmatmul.msk.f32.gmra.mxu2 %vm524_vm7, %v521_v13  ;;  %625 = vmatmul.msk.f32.gmra.mxu3 %vm524_vm7, %v523_v18 }
  0x94   :  { %619 = vmatmul.msk.f32.gmra.mxu0 %vm524_vm7, %v517_v31  ;;  %621 = vmatmul.msk.f32.gmra.mxu1 %vm524_vm7, %v519_v57 }
 0x109   :  { %v566_v58 = vpop.f32.mrf.mxu0  ;;  %v572_v11 = vpop.f32.mrf.mxu1 }
 0x10a   :  { %590 = vst [vmem:[%s1405_s5] sm:$0xff] %v566_v58 }
 0x10b   :  { %592 = vst [vmem:[%s1405_s5 + $0x10] sm:$0xff] %v572_v11 }
 0x10d   :  { %v578_v14 = vpop.f32.mrf.mxu2  ;;  %v584_v19 = vpop.f32.mrf.mxu3 }
 0x10e   :  { %594 = vst [vmem:[%s1405_s5 + $0x20] sm:$0xff] %v578_v14 }
 0x10f   :  { %596 = vst [vmem:[%s1405_s5 + $0x30] sm:$0xff] %v584_v19 }
 0x111   :  { %v569_v22 = vpop.f32.mrf.mxu0  ;;  %v575_v15 = vpop.f32.mrf.mxu1 }
 0x112   :  { %591 = vst [vmem:[%s1405_s5 + $0x8] sm:$0xff] %v569_v22 }
 0x113   :  { %593 = vst [vmem:[%s1405_s5 + $0x18] sm:$0xff] %v575_v15 }
 0x115   :  { %v581_v16 = vpop.f32.mrf.mxu2  ;;  %v587_v30 = vpop.f32.mrf.mxu3 }
 0x116   :  { %595 = vst [vmem:[%s1405_s5 + $0x28] sm:$0xff] %v581_v16 }
 0x117   :  { %597 = vst [vmem:[%s1405_s5 + $0x38] sm:$0xff] %v587_v30 }
 0x118   :  { %602 = vsyncpa [#allocation3], 1 }
 0x119   :  { %603 = vsyncpa [#allocation5], 1 }

</bundles_post_ra>
